<compile_context>
chip_gen: v5e
topology: v5e:2x2
jax: 0.10.0
libtpu: 0.0.40
codegen_flags: <defaults>
</compile_context>

<pallas_src>
import jax
import jax.numpy as jnp
from jax.experimental import pallas as pl
from jax.experimental.pallas import tpu as pltpu


# --------------------------------------------------------------------------- #
# Kernel
# --------------------------------------------------------------------------- #
def conv_block_kernel(x_ref, t1_ref, t2_ref, t3_ref, b_ref, m_ref, o_ref,
                      pad_x, pad_a):
    """One grid step = one batch sample; all three convs run out of VMEM.

    x_ref : (1, H, W*Cin)             lane-dense per-sample input slab
    tK_ref: ((W+2)*C_K, 3*W*Cout)     block-Toeplitz weights for layer K
    b_ref : (3, W*Cout)               per-layer bias, pre-tiled across W
    m_ref : (1, 3, W*Cout)            per-sample Dropout2d masks (scaled 1/(1-p); ones in eval)
    o_ref : (1, H, W*Cout)            lane-dense output slab
    pad_x : VMEM (H+2, (W+2)*Cin)     zero-halo scratch for the input
    pad_a : VMEM (H+2, (W+2)*Cout)    zero-halo scratch reused for both hidden activations
    """
    H = o_ref.shape[1]
    WCo = o_ref.shape[2]          # W * Cout
    WCi = x_ref.shape[2]          # W * Cin

    # Zero halos (cheap: ~2*(H+2)*(W+2)*C elems); borders / pad lanes are never written again
    # this step.  Re-zeroed every step so correctness does not depend on megacore scheduling.
    pad_x[...] = jnp.zeros_like(pad_x)
    pad_a[...] = jnp.zeros_like(pad_a)
    # Interior write at lane offset 0 (dense store).
    pad_x[1:H + 1, 0:WCi] = x_ref[0].astype(pad_x.dtype)

    b_all = b_ref[...]            # (3, W*Cout)
    m_all = m_ref[0]              # (3, W*Cout)

    def conv_relu_drop(pad_ref, t_ref, layer_idx):
        # ONE MXU matmul per layer: K = (W+2)*C, N = 3*W*Cout (kh taps folded into columns).
        z = jnp.dot(pad_ref[...].astype(t_ref.dtype), t_ref[...],
                    preferred_element_type=jnp.float32)          # (H+2, 3*W*Cout)
        # kh-combine: two lane-dense adds, lane slices on exact 128-lane boundaries.
        y = (z[0:H, 0:WCo]
             + z[1:H + 1, WCo:2 * WCo]
             + z[2:H + 2, 2 * WCo:3 * WCo])                      # (H, W*Cout)
        # Fused bias + ReLU + Dropout2d channel mask, all lane-dense.
        y = jnp.maximum(y + b_all[layer_idx:layer_idx + 1, :], 0.0)
        return y * m_all[layer_idx:layer_idx + 1, :]

    a1 = conv_relu_drop(pad_x, t1_ref, 0)
    pad_a[1:H + 1, 0:WCo] = a1.astype(pad_a.dtype)
    a2 = conv_relu_drop(pad_a, t2_ref, 1)
    pad_a[1:H + 1, 0:WCo] = a2.astype(pad_a.dtype)
    a3 = conv_relu_drop(pad_a, t3_ref, 2)

    o_ref[0] = a3.astype(o_ref.dtype)                            # lane-dense store


# --------------------------------------------------------------------------- #
# Wrapper
# --------------------------------------------------------------------------- #
def _toeplitz_rhs(w_oihw, width, dtype):
    """(Cout, Cin, 3, 3) -> ((W+2)*Cin, 3*W*Cout) block-Toeplitz weight matrix.

    Row p = jc*Cin + c corresponds to padded input column jc+1, channel c (the trailing 2*Cin
    rows are the two zero-pad columns).  Column q = kh*W*Cout + j*Cout + o.  Entry is
    w[o, c, kh, jc-j+1] when 0 <= jc-j+1 <= 2 else 0, so with Z = P @ T:
        y[i, j, o] = sum_kh Z[i+kh, kh, j, o].
    """
    cout, cin = w_oihw.shape[0], w_oihw.shape[1]
    jc = jnp.arange(width)[:, None]                      # input (interior) column index
    j = jnp.arange(width)[None, :]                       # output column index
    kw = jc - j + 1                                      # (W, W)
    valid = (kw >= 0) & (kw <= 2)
    kw_c = jnp.clip(kw, 0, 2)
    wt = jnp.transpose(w_oihw, (1, 2, 3, 0))             # (Cin, 3, 3, Cout) = [c, kh, kw, o]
    g = wt[:, :, kw_c, :]                                # (Cin, 3, W_jc, W_j, Cout)
    g = jnp.where(valid[None, None, :, :, None], g, 0.0)
    t_int = jnp.transpose(g, (2, 0, 1, 3, 4))            # (W_jc, Cin, 3, W_j, Cout)
    t_int = t_int.reshape(width * cin, 3 * width * cout)
    t_pad = jnp.zeros((2 * cin, 3 * width * cout), t_int.dtype)
    return jnp.concatenate([t_int, t_pad], axis=0).astype(dtype)


def conv_block_pallas(x_nhwc, params, masks, use_bf16_matmul=False):
    """Fused ConvBlock forward (NHWC in / NHWC out) via one pallas_call."""
    N, H, W, Cin = x_nhwc.shape
    Cout = params["w1"].shape[0]
    WCo = W * Cout
    L1, L2 = (W + 2) * Cin, (W + 2) * Cout

    # bf16 operands use the native v6e/v7x MXU path (kept off by default for the f32 check).
    dot_dtype = jnp.bfloat16 if use_bf16_matmul else jnp.float32
    t1 = _toeplitz_rhs(params["w1"], W, dot_dtype)
    t2 = _toeplitz_rhs(params["w2"], W, dot_dtype)
    t3 = _toeplitz_rhs(params["w3"], W, dot_dtype)

    # Bias / Dropout2d masks pre-tiled to lane-dense W*Cout rows, packed into single inputs.
    bias = jnp.stack([jnp.tile(params["b1"], W),
                      jnp.tile(params["b2"], W),
                      jnp.tile(params["b3"], W)]).astype(jnp.float32)           # (3, W*Cout)
    mask = jnp.tile(jnp.stack(masks, axis=1), (1, 1, W)).astype(jnp.float32)    # (N, 3, W*Cout)

    x_slab = x_nhwc.reshape(N, H, W * Cin)                                      # lane-dense input

    wbytes = 2 if use_bf16_matmul else 4
    flops = 2 * N * (H + 2) * (L1 + 2 * L2) * (3 * WCo)
    bytes_accessed = (4 * N * H * W * (Cin + Cout)
                      + wbytes * (L1 + 2 * L2) * 3 * WCo
                      + 4 * 3 * WCo + 4 * N * 3 * WCo)

    out = pl.pallas_call(
        conv_block_kernel,
        out_shape=jax.ShapeDtypeStruct((N, H, WCo), x_nhwc.dtype),
        grid_spec=pltpu.PrefetchScalarGridSpec(
            num_scalar_prefetch=0,
            grid=(N,),
            in_specs=[
                pl.BlockSpec((1, H, W * Cin), lambda n: (n, 0, 0)),   # per-sample input slab
                pl.BlockSpec((L1, 3 * WCo), lambda n: (0, 0)),        # grid-invariant weights
                pl.BlockSpec((L2, 3 * WCo), lambda n: (0, 0)),
                pl.BlockSpec((L2, 3 * WCo), lambda n: (0, 0)),
                pl.BlockSpec((3, WCo), lambda n: (0, 0)),             # packed, pre-tiled biases
                pl.BlockSpec((1, 3, WCo), lambda n: (n, 0, 0)),       # packed per-sample masks
            ],
            out_specs=pl.BlockSpec((1, H, WCo), lambda n: (n, 0, 0)),
            scratch_shapes=[
                pltpu.VMEM((H + 2, (W + 2) * Cin), jnp.float32),      # zero-halo input scratch
                pltpu.VMEM((H + 2, (W + 2) * Cout), jnp.float32),     # zero-halo activation scratch
            ],
        ),
        compiler_params=pltpu.CompilerParams(
            dimension_semantics=("parallel",),
            vmem_limit_bytes=32 * 1024 * 1024),
        cost_estimate=pl.CostEstimate(
            flops=flops, transcendentals=0, bytes_accessed=bytes_accessed),
    )(x_slab, t1, t2, t3, bias, mask)

    return out.reshape(N, H, W, Cout)


# --------------------------------------------------------------------------- #
# Module-level glue (params, dropout masks, forward, reference)
# --------------------------------------------------------------------------- #
def init_conv_block_params(key, in_ch, out_ch):
    """Deterministic PyTorch-style (uniform +-1/sqrt(fan_in)) init for the 3 convs."""
    ks = jax.random.split(key, 6)

    def conv_init(kw, kb, cin, cout):
        bound = 1.0 / ((cin * 9) ** 0.5)
        w = jax.random.uniform(kw, (cout, cin, 3, 3), jnp.float32, -bound, bound)
        b = jax.random.uniform(kb, (cout,), jnp.float32, -bound, bound)
        return w, b

    w1, b1 = conv_init(ks[0], ks[1], in_ch, out_ch)
    w2, b2 = conv_init(ks[2], ks[3], out_ch, out_ch)
    w3, b3 = conv_init(ks[4], ks[5], out_ch, out_ch)
    return dict(w1=w1, b1=b1, w2=w2, b2=b2, w3=w3, b3=b3)


def make_dropout2d_masks(key, n, cout, p=0.2, num_layers=3):
    """Dropout2d: per-(sample, channel) keep mask, scaled by 1/(1-p)."""
    keys = jax.random.split(key, num_layers)
    return [jax.random.bernoulli(k, 1.0 - p, (n, cout)).astype(jnp.float32) / (1.0 - p)
            for k in keys]


def conv_block_forward(params, x_nchw, isdropout=False, dropout_key=None, p=0.2,
                       masks=None, use_bf16_matmul=False):
    """ConvBlock.forward. PyTorch NCHW boundary; the fused kernel runs lane-dense NHWC.

    Per layer: conv -> ReLU -> (Dropout2d), matching the PyTorch module ordering.  The Dropout2d
    channel masks are generated here (or passed in) and applied INSIDE the fused kernel.
    """
    N = x_nchw.shape[0]
    Cout = params["w1"].shape[0]
    x = jnp.transpose(x_nchw, (0, 2, 3, 1))          # single boundary transpose pair
    if masks is None:
        if isdropout and dropout_key is not None:
            masks = make_dropout2d_masks(dropout_key, N, Cout, p)
        else:
            masks = [jnp.ones((N, Cout), jnp.float32)] * 3
    y = conv_block_pallas(x, params, masks, use_bf16_matmul=use_bf16_matmul)
    return jnp.transpose(y, (0, 3, 1, 2))


def reference_forward(params, x_nchw, masks=None):
    """Pure-JAX reference (XLA conv); optional Dropout2d masks for the training path."""
    def conv(x, w, b):
        y = jax.lax.conv_general_dilated(
            x, w, window_strides=(1, 1), padding="SAME",
            dimension_numbers=("NCHW", "OIHW", "NCHW"))
        return jax.nn.relu(y + b[None, :, None, None])

    ms = masks if masks is not None else [None, None, None]
    x = conv(x_nchw, params["w1"], params["b1"])
    if ms[0] is not None:
        x = x * ms[0][:, :, None, None]
    x = conv(x, params["w2"], params["b2"])
    if ms[1] is not None:
        x = x * ms[1][:, :, None, None]
    x = conv(x, params["w3"], params["b3"])
    if ms[2] is not None:
        x = x * ms[2][:, :, None, None]
    return x


if __name__ == "__main__":
    key = jax.random.PRNGKey(0)
    k_x, k_p, k_d = jax.random.split(key, 3)

    N, in_ch, out_ch, H, W = 2, 4, 8, 16, 16
    x = jax.random.normal(k_x, (N, in_ch, H, W), jnp.float32)   # PyTorch NCHW input
    params = init_conv_block_params(k_p, in_ch, out_ch)

    # Eval-mode path (isdropout=False), f32 operands: tight check vs the XLA reference.
    out = jax.block_until_ready(conv_block_forward(params, x, isdropout=False))
    ref = reference_forward(params, x)
    assert out.shape == (N, out_ch, H, W)
    assert jnp.allclose(out, ref, atol=1e-4, rtol=1e-4), "mismatch vs XLA reference"

    # Training-mode path: Dropout2d channel masks applied inside the kernel, checked against a
    # masked XLA reference (catches per-sample mask indexing bugs).
    masks = make_dropout2d_masks(k_d, N, out_ch, p=0.2)
    out_d = jax.block_until_ready(
        conv_block_forward(params, x, isdropout=True, masks=masks))
    ref_d = reference_forward(params, x, masks=masks)
    assert jnp.allclose(out_d, ref_d, atol=1e-4, rtol=1e-4), "mismatch vs masked reference"

    # bf16-operand MXU path (v6e/v7x): verified with a looser tolerance.
    out_bf = jax.block_until_ready(conv_block_forward(params, x, use_bf16_matmul=True))
    assert jnp.allclose(out_bf, ref, atol=5e-2, rtol=5e-2), "bf16 path mismatch"

    print("KERNEL_OK")
</pallas_src>

<mosaic_0001>
module attributes {stable_mosaic.version = 11 : i64} {
  func.func @conv_block_kernel(%arg0: i32, %arg1: memref<1x16x64xf32, #tpu.memory_space<vmem>>, %arg2: memref<72x384xf32, #tpu.memory_space<vmem>>, %arg3: memref<144x384xf32, #tpu.memory_space<vmem>>, %arg4: memref<144x384xf32, #tpu.memory_space<vmem>>, %arg5: memref<3x128xf32, #tpu.memory_space<vmem>>, %arg6: memref<1x3x128xf32, #tpu.memory_space<vmem>>, %arg7: memref<1x16x128xf32, #tpu.memory_space<vmem>>, %arg8: memref<18x72xf32, #tpu.memory_space<vmem>>, %arg9: memref<18x144xf32, #tpu.memory_space<vmem>>) attributes {dimension_semantics = [#tpu.dimension_semantics<parallel>], iteration_bounds = array<i64: 2>, scalar_prefetch = 0 : i64, scratch_operands = 2 : i64, tpu.core_type = #tpu.core_type<tc>, window_params = [{transform_indices = @transform_0, window_bounds = array<i64: 1, 16, 64>}, {pipeline_mode = #tpu.pipeline_mode<synchronous>, transform_indices = @transform_1, window_bounds = array<i64: 72, 384>}, {pipeline_mode = #tpu.pipeline_mode<synchronous>, transform_indices = @transform_2, window_bounds = array<i64: 144, 384>}, {pipeline_mode = #tpu.pipeline_mode<synchronous>, transform_indices = @transform_3, window_bounds = array<i64: 144, 384>}, {pipeline_mode = #tpu.pipeline_mode<synchronous>, transform_indices = @transform_4, window_bounds = array<i64: 3, 128>}, {transform_indices = @transform_5, window_bounds = array<i64: 1, 3, 128>}, {transform_indices = @transform_6, window_bounds = array<i64: 1, 16, 128>}]} {
    %cst = arith.constant 0.000000e+00 : f32
    %0 = vector.broadcast %cst : f32 to vector<18x72xf32>
    %c0 = arith.constant 0 : index
    %c0_0 = arith.constant 0 : index
    %1 = vector.load %arg8[%c0, %c0_0] : memref<18x72xf32, #tpu.memory_space<vmem>>, vector<18x72xf32>
    tpu.vector_store %arg8[%c0, %c0_0], %0 {strides = array<i32>} : memref<18x72xf32, #tpu.memory_space<vmem>>, vector<18x72xf32>,
    %cst_1 = arith.constant 0.000000e+00 : f32
    %2 = vector.broadcast %cst_1 : f32 to vector<18x144xf32>
    %c0_2 = arith.constant 0 : index
    %c0_3 = arith.constant 0 : index
    %3 = vector.load %arg9[%c0_2, %c0_3] : memref<18x144xf32, #tpu.memory_space<vmem>>, vector<18x144xf32>
    tpu.vector_store %arg9[%c0_2, %c0_3], %2 {strides = array<i32>} : memref<18x144xf32, #tpu.memory_space<vmem>>, vector<18x144xf32>,
    %c0_4 = arith.constant 0 : index
    %c0_5 = arith.constant 0 : index
    %c0_6 = arith.constant 0 : index
    %4 = vector.load %arg1[%c0_4, %c0_5, %c0_6] : memref<1x16x64xf32, #tpu.memory_space<vmem>>, vector<1x16x64xf32>
    %5 = vector.shape_cast %4 : vector<1x16x64xf32> to vector<16x64xf32>
    %c1 = arith.constant 1 : index
    %c0_7 = arith.constant 0 : index
    %6 = vector.load %arg8[%c1, %c0_7] : memref<18x72xf32, #tpu.memory_space<vmem>>, vector<16x64xf32>
    tpu.vector_store %arg8[%c1, %c0_7], %5 {strides = array<i32>} : memref<18x72xf32, #tpu.memory_space<vmem>>, vector<16x64xf32>,
    %c0_8 = arith.constant 0 : index
    %c0_9 = arith.constant 0 : index
    %7 = vector.load %arg5[%c0_8, %c0_9] : memref<3x128xf32, #tpu.memory_space<vmem>>, vector<3x128xf32>
    %c0_10 = arith.constant 0 : index
    %c0_11 = arith.constant 0 : index
    %c0_12 = arith.constant 0 : index
    %8 = vector.load %arg6[%c0_10, %c0_11, %c0_12] : memref<1x3x128xf32, #tpu.memory_space<vmem>>, vector<1x3x128xf32>
    %9 = vector.shape_cast %8 : vector<1x3x128xf32> to vector<3x128xf32>
    %c0_13 = arith.constant 0 : index
    %c0_14 = arith.constant 0 : index
    %10 = vector.load %arg8[%c0_13, %c0_14] : memref<18x72xf32, #tpu.memory_space<vmem>>, vector<18x72xf32>
    %c0_15 = arith.constant 0 : index
    %c0_16 = arith.constant 0 : index
    %11 = vector.load %arg2[%c0_15, %c0_16] : memref<72x384xf32, #tpu.memory_space<vmem>>, vector<72x384xf32>
    %cst_17 = arith.constant dense<0.000000e+00> : vector<18x384xf32>
    %12 = tpu.matmul %10, %11, %cst_17 {dimension_numbers = #tpu.dot_dimension_numbers<[1], [0], [0], [1], [0, 0, 1, 1], [], []>} : vector<18x72xf32>, vector<72x384xf32>, vector<18x384xf32> -> vector<18x384xf32>
    %13 = vector.extract_strided_slice %12 {offsets = [0, 0], sizes = [16, 128], strides = [1, 1]} : vector<18x384xf32> to vector<16x128xf32>
    %14 = vector.extract_strided_slice %12 {offsets = [1, 128], sizes = [16, 128], strides = [1, 1]} : vector<18x384xf32> to vector<16x128xf32>
    %15 = arith.addf %13, %14 : vector<16x128xf32>
    %16 = vector.extract_strided_slice %12 {offsets = [2, 256], sizes = [16, 128], strides = [1, 1]} : vector<18x384xf32> to vector<16x128xf32>
    %17 = arith.addf %15, %16 : vector<16x128xf32>
    %18 = vector.extract_strided_slice %7 {offsets = [0, 0], sizes = [1, 128], strides = [1, 1]} : vector<3x128xf32> to vector<1x128xf32>
    %19 = vector.broadcast %18 : vector<1x128xf32> to vector<16x128xf32>
    %20 = arith.addf %17, %19 : vector<16x128xf32>
    %cst_18 = arith.constant 0.000000e+00 : f32
    %21 = vector.broadcast %cst_18 : f32 to vector<16x128xf32>
    %22 = arith.maximumf %20, %21 : vector<16x128xf32>
    %23 = vector.extract_strided_slice %9 {offsets = [0, 0], sizes = [1, 128], strides = [1, 1]} : vector<3x128xf32> to vector<1x128xf32>
    %24 = vector.broadcast %23 : vector<1x128xf32> to vector<16x128xf32>
    %25 = arith.mulf %22, %24 : vector<16x128xf32>
    %c1_19 = arith.constant 1 : index
    %c0_20 = arith.constant 0 : index
    %26 = vector.load %arg9[%c1_19, %c0_20] : memref<18x144xf32, #tpu.memory_space<vmem>>, vector<16x128xf32>
    tpu.vector_store %arg9[%c1_19, %c0_20], %25 {strides = array<i32>} : memref<18x144xf32, #tpu.memory_space<vmem>>, vector<16x128xf32>,
    %c0_21 = arith.constant 0 : index
    %c0_22 = arith.constant 0 : index
    %27 = vector.load %arg9[%c0_21, %c0_22] : memref<18x144xf32, #tpu.memory_space<vmem>>, vector<18x144xf32>
    %c0_23 = arith.constant 0 : index
    %c0_24 = arith.constant 0 : index
    %28 = vector.load %arg3[%c0_23, %c0_24] : memref<144x384xf32, #tpu.memory_space<vmem>>, vector<144x384xf32>
    %cst_25 = arith.constant dense<0.000000e+00> : vector<18x384xf32>
    %29 = tpu.matmul %27, %28, %cst_25 {dimension_numbers = #tpu.dot_dimension_numbers<[1], [0], [0], [1], [0, 0, 1, 1], [], []>} : vector<18x144xf32>, vector<144x384xf32>, vector<18x384xf32> -> vector<18x384xf32>
    %30 = vector.extract_strided_slice %29 {offsets = [0, 0], sizes = [16, 128], strides = [1, 1]} : vector<18x384xf32> to vector<16x128xf32>
    %31 = vector.extract_strided_slice %29 {offsets = [1, 128], sizes = [16, 128], strides = [1, 1]} : vector<18x384xf32> to vector<16x128xf32>
    %32 = arith.addf %30, %31 : vector<16x128xf32>
    %33 = vector.extract_strided_slice %29 {offsets = [2, 256], sizes = [16, 128], strides = [1, 1]} : vector<18x384xf32> to vector<16x128xf32>
    %34 = arith.addf %32, %33 : vector<16x128xf32>
    %35 = vector.extract_strided_slice %7 {offsets = [1, 0], sizes = [1, 128], strides = [1, 1]} : vector<3x128xf32> to vector<1x128xf32>
    %36 = vector.broadcast %35 : vector<1x128xf32> to vector<16x128xf32>
    %37 = arith.addf %34, %36 : vector<16x128xf32>
    %cst_26 = arith.constant 0.000000e+00 : f32
    %38 = vector.broadcast %cst_26 : f32 to vector<16x128xf32>
    %39 = arith.maximumf %37, %38 : vector<16x128xf32>
    %40 = vector.extract_strided_slice %9 {offsets = [1, 0], sizes = [1, 128], strides = [1, 1]} : vector<3x128xf32> to vector<1x128xf32>
    %41 = vector.broadcast %40 : vector<1x128xf32> to vector<16x128xf32>
    %42 = arith.mulf %39, %41 : vector<16x128xf32>
    %c1_27 = arith.constant 1 : index
    %c0_28 = arith.constant 0 : index
    %43 = vector.load %arg9[%c1_27, %c0_28] : memref<18x144xf32, #tpu.memory_space<vmem>>, vector<16x128xf32>
    tpu.vector_store %arg9[%c1_27, %c0_28], %42 {strides = array<i32>} : memref<18x144xf32, #tpu.memory_space<vmem>>, vector<16x128xf32>,
    %c0_29 = arith.constant 0 : index
    %c0_30 = arith.constant 0 : index
    %44 = vector.load %arg9[%c0_29, %c0_30] : memref<18x144xf32, #tpu.memory_space<vmem>>, vector<18x144xf32>
    %c0_31 = arith.constant 0 : index
    %c0_32 = arith.constant 0 : index
    %45 = vector.load %arg4[%c0_31, %c0_32] : memref<144x384xf32, #tpu.memory_space<vmem>>, vector<144x384xf32>
    %cst_33 = arith.constant dense<0.000000e+00> : vector<18x384xf32>
    %46 = tpu.matmul %44, %45, %cst_33 {dimension_numbers = #tpu.dot_dimension_numbers<[1], [0], [0], [1], [0, 0, 1, 1], [], []>} : vector<18x144xf32>, vector<144x384xf32>, vector<18x384xf32> -> vector<18x384xf32>
    %47 = vector.extract_strided_slice %46 {offsets = [0, 0], sizes = [16, 128], strides = [1, 1]} : vector<18x384xf32> to vector<16x128xf32>
    %48 = vector.extract_strided_slice %46 {offsets = [1, 128], sizes = [16, 128], strides = [1, 1]} : vector<18x384xf32> to vector<16x128xf32>
    %49 = arith.addf %47, %48 : vector<16x128xf32>
    %50 = vector.extract_strided_slice %46 {offsets = [2, 256], sizes = [16, 128], strides = [1, 1]} : vector<18x384xf32> to vector<16x128xf32>
    %51 = arith.addf %49, %50 : vector<16x128xf32>
    %52 = vector.extract_strided_slice %7 {offsets = [2, 0], sizes = [1, 128], strides = [1, 1]} : vector<3x128xf32> to vector<1x128xf32>
    %53 = vector.broadcast %52 : vector<1x128xf32> to vector<16x128xf32>
    %54 = arith.addf %51, %53 : vector<16x128xf32>
    %cst_34 = arith.constant 0.000000e+00 : f32
    %55 = vector.broadcast %cst_34 : f32 to vector<16x128xf32>
    %56 = arith.maximumf %54, %55 : vector<16x128xf32>
    %57 = vector.extract_strided_slice %9 {offsets = [2, 0], sizes = [1, 128], strides = [1, 1]} : vector<3x128xf32> to vector<1x128xf32>
    %58 = vector.broadcast %57 : vector<1x128xf32> to vector<16x128xf32>
    %59 = arith.mulf %56, %58 : vector<16x128xf32>
    %c0_35 = arith.constant 0 : index
    %c0_36 = arith.constant 0 : index
    %c0_37 = arith.constant 0 : index
    %60 = vector.load %arg7[%c0_35, %c0_36, %c0_37] : memref<1x16x128xf32, #tpu.memory_space<vmem>>, vector<1x16x128xf32>
    %61 = vector.shape_cast %60 : vector<1x16x128xf32> to vector<16x128xf32>
    %62 = vector.shape_cast %59 : vector<16x128xf32> to vector<1x16x128xf32>
    tpu.vector_store %arg7[%c0_35, %c0_36, %c0_37], %62 {strides = array<i32>} : memref<1x16x128xf32, #tpu.memory_space<vmem>>, vector<1x16x128xf32>,
    return
  }
  func.func @transform_0(%arg0: i32) -> (i32, i32, i32) {
    %c0_i32 = arith.constant 0 : i32
    %c0_i32_0 = arith.constant 0 : i32
    %c0_i32_1 = arith.constant 0 : i32
    return %arg0, %c0_i32, %c0_i32_0 : i32, i32, i32
  }
  func.func @transform_1(%arg0: i32) -> (i32, i32) {
    %c0_i32 = arith.constant 0 : i32
    %c0_i32_0 = arith.constant 0 : i32
    %c0_i32_1 = arith.constant 0 : i32
    return %c0_i32, %c0_i32_0 : i32, i32
  }
  func.func @transform_2(%arg0: i32) -> (i32, i32) {
    %c0_i32 = arith.constant 0 : i32
    %c0_i32_0 = arith.constant 0 : i32
    %c0_i32_1 = arith.constant 0 : i32
    return %c0_i32, %c0_i32_0 : i32, i32
  }
  func.func @transform_3(%arg0: i32) -> (i32, i32) {
    %c0_i32 = arith.constant 0 : i32
    %c0_i32_0 = arith.constant 0 : i32
    %c0_i32_1 = arith.constant 0 : i32
    return %c0_i32, %c0_i32_0 : i32, i32
  }
  func.func @transform_4(%arg0: i32) -> (i32, i32) {
    %c0_i32 = arith.constant 0 : i32
    %c0_i32_0 = arith.constant 0 : i32
    %c0_i32_1 = arith.constant 0 : i32
    return %c0_i32, %c0_i32_0 : i32, i32
  }
  func.func @transform_5(%arg0: i32) -> (i32, i32, i32) {
    %c0_i32 = arith.constant 0 : i32
    %c0_i32_0 = arith.constant 0 : i32
    %c0_i32_1 = arith.constant 0 : i32
    return %arg0, %c0_i32, %c0_i32_0 : i32, i32, i32
  }
  func.func @transform_6(%arg0: i32) -> (i32, i32, i32) {
    %c0_i32 = arith.constant 0 : i32
    %c0_i32_0 = arith.constant 0 : i32
    %c0_i32_1 = arith.constant 0 : i32
    return %arg0, %c0_i32, %c0_i32_0 : i32, i32, i32
  }
}

</mosaic_0001>

<bundles_post_ra>
// kernel: tpu_custom_call.1
= control target key start
LH: loop header
LB: loop body
LE: loop exit
PB: predicated region body
PF: predicated region fallthrough
CT: control target
= control target key end

     0   :  { %11 = vsyncpa [#allocation5], 0  ;;  %s1825_s0 = inlined_call_operand.hbm [shape: f32[2,16,64], index: 0, kind: input, shape index: {}]   ;;  %s1826_s1 = inlined_call_operand.hbm [shape: f32[72,384], index: 1, kind: input, shape index: {}]   ;;  %s1827_s2 = inlined_call_operand.hbm [shape: f32[144,384], index: 2, kind: input, shape index: {}]   ;;  %s1828_s3 = inlined_call_operand.hbm [shape: f32[144,384], index: 3, kind: input, shape index: {}]   ;;  %s1829_s4 = inlined_call_operand.vmem [shape: f32[3,128], index: 4, kind: input, shape index: {}]   ;;  %s1830_s5 = inlined_call_operand.vmem [shape: f32[2,3,128], index: 5, kind: input, shape index: {}]   ;;  %s1831_s6 = inlined_call_operand.hbm [shape: f32[2,16,128], index: 6, kind: output, shape index: {}]  }
   0x1   :  { %13 = vsyncpa [#allocation5 + $0x1], 0 }
   0x2   :  { %14 = vsyncpa [#allocation8], 0 }
   0x3   :  { %15 = vsyncpa [#allocation11], 0 }
   0x4   :  { %16 = vsyncpa [#allocation6], 0 }
   0x5   :  { %18 = vsyncpa [#allocation6 + $0x1], 0  ;;  %s1549_s21 = smov 0   ;;  %s1551_s22 = smov 0  }
   0x6   :  { %s1553_s23 = smov 0   ;;  %s1555_s24 = smov 0  }
   0x7 LB: > { %s1570_s25 = sadd.s32 4294967295, %s1502_s24   ;;  %s1174_s26 = sadd.s32 4294967294, %s1502_s24   ;;  %s1502_s24 = sphi %s1555_s24, %s1842_s24   ;;  %s1498_s23 = sphi %s1553_s23, %s1841_s23   ;;  %s1494_s22 = sphi %s1551_s22, %s1840_s22   ;;  %s1490_s21 = sphi %s1549_s21, %s1839_s21  }
   0x8   : > { %p44_p0 = scmp.ne.s32.totalorder %s1494_s22, %s1490_s21  ;;  %p45_p1 = scmp.eq.s32.totalorder %s1570_s25, 0 }
   0x9   : > { %p178_p2 = scmp.eq.s32.totalorder %s1570_s25, 1  ;;  %p184_p3 = scmp.eq.s32.totalorder %s1174_s26, 1 }
   0xa   : > { %p1579_p4 = por %p45_p1, %p44_p0  ;;  %p1175_p5 = scmp.ge.s32.totalorder %s1502_s24, 1 }
   0xb   : > { %p1584_p6 = por %p184_p3, %p44_p0  ;;  %p191_p7 = scmp.lt.s32.totalorder %s1502_s24, 3 }
   0xc   : > { %s202_s7 = sshll.u32 %s1826_s1, 4  ;;  %s1504_s9 = smov [#allocation7]   ;;  %s203_s7 = int_to_ptr.hbm [resolvable:$true] %s202_s7 }
   0xd   : > { %p1592_p8 = pnand %p1175_p5, %p191_p7  ;;  %s204_s10 = sshll.u32 %s1504_s9, 4  ;;  %s205_s10 = int_to_ptr.vmem [resolvable:$true] %s204_s10 }
   0xe   : > { %s216_s14 = sshll.u32 %s1827_s2, 4  ;;  %s1505_s15 = smov 384   ;;  %s217_s14 = int_to_ptr.hbm [resolvable:$true] %s216_s14 }
   0xf   : > { %p1240_p9 = pneg %p1592_p8  ;;  %s1506_s16 = smov 24  }
  0x10   : > { %s1507_s17 = smov [#allocation9]   ;;  %s230_s26 = sshll.u32 %s1828_s3, 4  ;;  %s231_s26 = int_to_ptr.hbm [resolvable:$true] %s230_s26 }
  0x11   : > { %p1600_p10 = pnand %p1240_p9, %p45_p1  ;;  %s218_s18 = sshll.u32 %s1507_s17, 4  ;;  %s219_s18 = int_to_ptr.vmem [resolvable:$true] %s218_s18 }
  0x12   : > { %s1508_s29 = smov [#allocation10]   ;;  %p38_p13 = scmp.ne.s32.totalorder %s1498_s23, %s1494_s22 }
  0x13   : > { %1243 = dma.hbm_to_vmem [thread:$0]  (!%p1600_p10), %s203_s7, 3456, %s205_s10, [#allocation8], %s1505_s15, %s1505_s15, %s1506_s16  }
  0x14   : > { %1246 = dma.hbm_to_vmem [thread:$0]  (!%p1600_p10), %s217_s14, 6912, %s219_s18, [#allocation8], %s1505_s15, %s1505_s15, %s1506_s16  }
  0x15   : > { %s232_s30 = sshll.u32 %s1508_s29, 4  ;;  %s1616_s7 = sadd.s32 1, %s1502_s24   ;;  %s233_s30 = int_to_ptr.vmem [resolvable:$true] %s232_s30 }
  0x16   : > { %1249 = dma.hbm_to_vmem [thread:$0]  (!%p1600_p10), %s231_s26, 6912, %s233_s30, [#allocation11], %s1505_s15, %s1505_s15, %s1506_s16  }
  0x17   : > { %s28_s9 = ssub.s32 %s1502_s24, %s1616_s7  ;;  %s31_s10 = sadd.s32 1, %s1498_s23 }
  0x18   : > { %p29_p12 = scmp.eq.s32.totalorder %s28_s9, 0  ;;  %p39_p0 = scmp.eq.s32.totalorder %s1502_s24, 0 }
  0x19   : > { %p1261_p3 = scmp.lt.s32.totalorder %s1502_s24, 2  ;;  %p1632_p7 = por %p178_p2, %p38_p13 }
  0x1a   : > { %s1628_s12 = scalar_select %p29_p12, %s1498_s23, %s31_s10  }
  0x1b   : > { %p40_p5 = por %p39_p0, %p38_p13  ;;  %s249_s14 = sand.u32 1, %s1498_s23  }
  0x1c   : > { %s1222_s17 = sshll.u32 %s1502_s24, 4  ;;  %s1180_s11 = sshll.u32 %s249_s14, 4 }
  0x1d   : > { %s258_s16 = scalar_lea.hbm %s1825_s0, %s1222_s17  ;;  %s253_s20 = scalar_lea.vmem [#allocation4], %s1180_s11 }
  0x1e   : > { %s259_s19 = sshll.u32 %s258_s16, 4  ;;  %s261_s26 = sshll.u32 %s253_s20, 4  ;;  %s260_s19 = int_to_ptr.hbm [resolvable:$true] %s259_s19  ;;  %s262_s26 = int_to_ptr.vmem [resolvable:$true] %s261_s26 }
  0x1f   : > { %p1643_p9 = pnand %p1261_p3, %p40_p5  ;;  %s250_s30 = scalar_lea.sflag [#allocation5], %s249_s14 }
  0x20   : > { %s1398_s9 = sshra.s32 %s260_s19, 4  ;;  %s1405_s18 = scalar_lea.hbm %s1825_s0, 32  ;;  %s1399_s9 = int_to_ptr.hbm [resolvable:$true] %s1398_s9 }
  0x21   : > { %s1400_s10 = scalar_lea.hbm %s1399_s9, 16  ;;  %p1402_p10 = pneg %p1643_p9 }
  0x22   : > { %p1401_p2 = scmp.ne.s32.totalorder %s1399_s9, %s1400_s10  ;;  %p1406_p0 = scmp.lt.s32.totalorder %s1399_s9, %s1825_s0 }
  0x23   : > { %p1407_p3 = scmp.lt.s32.totalorder %s1405_s18, %s1400_s10 }
  0x24   : > { %p1403_p12 = pnand %p1402_p10, %p1401_p2 }
  0x25   : > { %p1408_p5 = por %p1407_p3, %p1406_p0 }
  0x26   : > { %p1404_p13 = pneg %p1403_p12 }
  0x28   : > { %p1409_p11 = pnand %p1408_p5, %p1404_p13 }
  0x2a   : > { %1412 = shalt.err (!%p1409_p11)
}
  0x2b   : > { %s1509_s14 = smov 128   ;;  %s1510_s20 = smov 8  }
  0x2c   : > { %1253 = dma.hbm_to_vmem [thread:$0]  (!%p1643_p9), %s260_s19, 256, %s262_s26, %s250_s30, %s1509_s14, %s1509_s14, %s1510_s20  }
  0x2d   : > { %280 = sbr.rel (%p1592_p8) target bundleno = 611 (0x263), region = 44  ;;  %s1660_s17 = sand.u32 (!%p1592_p8), 1, %s1494_s22  }
  0x2e   : > { %s1184_s9 = sshll.u32 (!%p1592_p8), %s1660_s17, 4  ;;  %s283_s10 = scalar_lea.sflag (!%p1592_p8), [#allocation5], %s1660_s17 }
  0x2f   : > { %s1666_s11 = scalar_lea.vmem (!%p1592_p8), [#allocation4], %s1184_s9 }
  0x32   : > { %1473 = dma.done.wait (%p1579_p4), %s283_s10, 256  }
  0x33   : > { %1475 = vsyncadd (%p1579_p4), %s283_s10, 4294967040 }
  0x34   : > { %1477 = dma.done.wait (%p45_p1), [#allocation8], 10368  }
  0x35   : > { %1479 = vsyncadd (%p45_p1), [#allocation8], 4294956928 }
  0x36   : > { %1481 = dma.done.wait (%p45_p1), [#allocation11], 6912  }
  0x37   : > { %1483 = vsyncadd (%p45_p1), [#allocation11], 4294960384  ;;  %vm339_vm0 = vcmask 588800   ;;  %v1511_v0 = vmov 0.0   ;;  %vm342_vm1 = vcmask 582656   ;;  %v387_v1 = vld [vmem:[#allocation7 + $0xc8] sm:$0xff] }
  0x38   : > { %340 = vst.msk [vmem:[#allocation2] sm:$0xff] %vm339_vm0, %v1511_v0  ;;  %v388_v2 = vld [vmem:[#allocation7 + $0xd0] sm:$0xff]  ;;  %430 = vmatpush.msra.mxu1 %v387_v1  ;;  %v385_v4 = vld [vmem:[#allocation7 + $0xb8] sm:$0xff]  ;;  %v382_v6 = vld [vmem:[#allocation7 + $0xa0] sm:$0xff]  ;;  %vm354_vm2 = vcmask 523264   ;;  %vm345_vm3 = vcmask 130048  }
  0x39   : > { %341 = vst.msk [vmem:[#allocation2 + $0x8] sm:$0xff] %vm339_vm0, %v1511_v0  ;;  %v384_v3 = vld [vmem:[#allocation7 + $0xb0] sm:$0xff]  ;;  %456 = vmatpush.msra.mxu2 %v388_v2  ;;  %v381_v5 = vld [vmem:[#allocation7 + $0x98] sm:$0xff]  ;;  %v378_v7 = vld [vmem:[#allocation7 + $0x80] sm:$0xff]  ;;  %p335_p1 = scmp.lt.s32.totalorder %s1570_s25, 1  ;;  %vm350_vm4 = vcmask 123904  }
  0x3a   : > { %344 = vst [vmem:[#allocation3] sm:$0xff] %v1511_v0  ;;  %431 = vmatpush.msra.mxu1 %v384_v3  ;;  %v379_v8 = vld [vmem:[#allocation7 + $0x88] sm:$0xff]  ;;  %v386_v9 = vld [vmem:[#allocation7 + $0xc0] sm:$0xff]  ;;  %v376_v12 = vld [vmem:[#allocation7 + $0x70] sm:$0xff]  ;;  %vm478_vm5 = vcmask 1046528   ;;  %vm491_vm6 = vcmask 1045504  }
  0x3b   : > { %349 = vst [vmem:[#allocation3 + $0x20] sm:$0x3] %v1511_v0  ;;  %457 = vmatpush.msra.mxu2 %v385_v4  ;;  %v383_v10 = vld [vmem:[#allocation7 + $0xa8] sm:$0xff]  ;;  %405 = vmatpush.msra.mxu0 %v386_v9  ;;  %v380_v13 = vld [vmem:[#allocation7 + $0x90] sm:$0xff]  ;;  %v373_v16 = vld [vmem:[#allocation7 + $0x58] sm:$0xff]  ;;  %s336_s27 = scalar_select %p335_p1, %s1570_s25, 1 }
  0x3c   : > { %343 = vst.msk [vmem:[#allocation2 + $0x10] sm:$0x3] %vm342_vm1, %v1511_v0  ;;  %432 = vmatpush.msra.mxu1 %v381_v5  ;;  %v375_v11 = vld [vmem:[#allocation7 + $0x68] sm:$0xff]  ;;  %v352_v14 = vld [vmem:[%s1666_s11] sm:$0xff]  ;;  %v377_v17 = vld [vmem:[#allocation7 + $0x78] sm:$0xff]  ;;  %vm511_vm7 = vcmask 1040384  }
  0x3d   : > { %458 = vmatpush.msra.mxu2 %v382_v6  ;;  %v372_v15 = vld [vmem:[#allocation7 + $0x50] sm:$0xff]  ;;  %406 = vmatpush.msra.mxu0 %v383_v10  ;;  %355 = vst.msk [vmem:[#allocation2 + $0x1] sm:$0xff] %vm354_vm2, %v352_v14  ;;  %v353_v18 = vld [vmem:[%s1666_s11 + $0x8] sm:$0xff]  ;;  %v572_v19 = vld [vmem:[#allocation9 + $0x168] sm:$0xff]  ;;  %s1189_s8 = sshll.u32 %s336_s27, 2  ;;  %s1223_s15 = sshll.u32 %s1570_s25, 4 }
  0x3e   : > { %433 = vmatpush.msra.mxu1 %v378_v7  ;;  %v369_v20 = vld [vmem:[#allocation7 + $0x38] sm:$0xff]  ;;  %v370_v21 = vld [vmem:[#allocation7 + $0x40] sm:$0xff]  ;;  %356 = vst.msk [vmem:[#allocation2 + $0x9] sm:$0xff] %vm354_vm2, %v353_v18  ;;  %590 = vmatpush.msra.mxu3 %v572_v19  ;;  %v367_v24 = vld [vmem:[#allocation7 + $0x28] sm:$0xff]  ;;  %s338_s18 = scalar_lea.vmem %s1830_s5, %s1189_s8  ;;  %s1056_s20 = scalar_lea.hbm %s1831_s6, %s1223_s15 }
  0x3f   : > { %459 = vmatpush.msra.mxu2 %v379_v8  ;;  %407 = vmatpush.msra.mxu0 %v380_v13  ;;  %v374_v22 = vld [vmem:[#allocation7 + $0x60] sm:$0xff]  ;;  %v371_v25 = vld [vmem:[#allocation7 + $0x48] sm:$0xff]  ;;  %v364_v27 = vld [vmem:[#allocation7 + $0x10] sm:$0xff]  ;;  %346 = vst.msk [vmem:[#allocation3 + $0x8] sm:$0xff] %vm345_vm3, %v1511_v0  ;;  %s334_s10 = scalar_lea.vmem [#allocation12], %s1184_s9  ;;  %s1059_s27 = sshll.u32 %s1056_s20, 4  ;;  %s1060_s27 = int_to_ptr.hbm [resolvable:$true] %s1059_s27 }
  0x40   : > { %434 = vmatpush.msra.mxu1 %v375_v11  ;;  %v366_v23 = vld [vmem:[#allocation7 + $0x20] sm:$0xff]  ;;  %v363_v26 = vld [vmem:[#allocation7 + $0x8] sm:$0xff]  ;;  %v368_v29 = vld [vmem:[#allocation7 + $0x30] sm:$0xff]  ;;  %348 = vst.msk [vmem:[#allocation3 + $0x18] sm:$0xff] %vm345_vm3, %v1511_v0  ;;  %s1057_s11 = sshll.u32 %s334_s10, 4  ;;  %s1045_s25 = scalar_lea.sflag [#allocation6], %s1660_s17  ;;  %s1058_s11 = int_to_ptr.vmem [resolvable:$true] %s1057_s11 }
  0x41   : > { %460 = vmatpush.msra.mxu2 %v376_v12  ;;  %408 = vmatpush.msra.mxu0 %v377_v17  ;;  %v365_v30 = vld [vmem:[#allocation7 + $0x18] sm:$0xff]  ;;  %v362_v31 = vld [vmem:[#allocation7] sm:$0xff]  ;;  %v569_v34 = vld [vmem:[#allocation9 + $0x150] sm:$0xff]  ;;  %351 = vst.msk [vmem:[#allocation3 + $0x28] sm:$0x3] %vm350_vm4, %v1511_v0  ;;  %s1442_s8 = sshra.s32 %s1060_s27, 4  ;;  %s1443_s8 = int_to_ptr.hbm [resolvable:$true] %s1442_s8 }
  0x42   : > { %435 = vmatpush.msra.mxu1 %v372_v15  ;;  %591 = vmatpush.msra.mxu3 %v569_v34  ;;  %v566_v35 = vld [vmem:[#allocation9 + $0x138] sm:$0xff]  ;;  %v563_v36 = vld [vmem:[#allocation9 + $0x120] sm:$0xff]  ;;  %v573_v37 = vld [vmem:[#allocation9 + $0x170] sm:$0xff]  ;;  %s1444_s19 = scalar_lea.hbm %s1443_s8, 16  ;;  %s1448_s9 = scalar_lea.hbm %s1831_s6, 32 }
  0x43   : > { %461 = vmatpush.msra.mxu2 %v373_v16  ;;  %409 = vmatpush.msra.mxu0 %v374_v22  ;;  %v560_v38 = vld [vmem:[#allocation9 + $0x108] sm:$0xff]  ;;  %v570_v39 = vld [vmem:[#allocation9 + $0x158] sm:$0xff]  ;;  %v557_v40 = vld [vmem:[#allocation9 + $0xf0] sm:$0xff]  ;;  %p1445_p4 = scmp.ne.s32.totalorder %s1443_s8, %s1444_s19  ;;  %p1449_p9 = scmp.lt.s32.totalorder %s1443_s8, %s1831_s6 }
  0x44   : > { %436 = vmatpush.msra.mxu1 %v369_v20  ;;  %v359_v28 = vld [vmem:[#allocation2] sm:$0xff]  ;;  %592 = vmatpush.msra.mxu3 %v566_v35  ;;  %v554_v42 = vld [vmem:[#allocation9 + $0xd8] sm:$0xff]  ;;  %v564_v43 = vld [vmem:[#allocation9 + $0x128] sm:$0xff]  ;;  %p1450_p2 = scmp.lt.s32.totalorder %s1448_s9, %s1444_s19 }
  0x45   : > { %462 = vmatpush.msra.mxu2 %v370_v21  ;;  %410 = vmatpush.msra.mxu0 %v371_v25  ;;  %v360_v32 = vld [vmem:[#allocation2 + $0x8] sm:$0xff]  ;;  %v361_v33 = vld [vmem:[#allocation2 + $0x10] sm:$0x3]  ;;  %v567_v41 = vld [vmem:[#allocation9 + $0x140] sm:$0xff]  ;;  %p1446_p8 = pnand %p1445_p4, %p1632_p7 }
  0x46   : > { %437 = vmatpush.msra.mxu1 %v366_v23  ;;  %593 = vmatpush.msra.mxu3 %v563_v36  ;;  %v551_v44 = vld [vmem:[#allocation9 + $0xc0] sm:$0xff]  ;;  %v561_v45 = vld [vmem:[#allocation9 + $0x110] sm:$0xff]  ;;  %v548_v46 = vld [vmem:[#allocation9 + $0xa8] sm:$0xff]  ;;  %p1451_p10 = por %p1450_p2, %p1449_p9 }
  0x47   : > { %463 = vmatpush.msra.mxu2 %v367_v24  ;;  %411 = vmatpush.msra.mxu0 %v368_v29  ;;  %v558_v47 = vld [vmem:[#allocation9 + $0xf8] sm:$0xff]  ;;  %v545_v48 = vld [vmem:[#allocation9 + $0x90] sm:$0xff]  ;;  %v555_v49 = vld [vmem:[#allocation9 + $0xe0] sm:$0xff]  ;;  %p1447_p11 = pneg %p1446_p8 }
  0x48   : > { %438 = vmatpush.msra.mxu1 %v363_v26  ;;  %594 = vmatpush.msra.mxu3 %v560_v38  ;;  %v542_v50 = vld [vmem:[#allocation9 + $0x78] sm:$0xff]  ;;  %v552_v51 = vld [vmem:[#allocation9 + $0xc8] sm:$0xff]  ;;  %v539_v52 = vld [vmem:[#allocation9 + $0x60] sm:$0xff] }
  0x49   : > { %464 = vmatpush.msra.mxu2 %v364_v27  ;;  %1193 = vmatmul.msk.f32.vlgmr.msra.gmra.mxu1 %vm339_vm0, %v359_v28  ;;  %v549_v53 = vld [vmem:[#allocation9 + $0xb0] sm:$0xff]  ;;  %v536_v54 = vld [vmem:[#allocation9 + $0x48] sm:$0xff]  ;;  %v546_v55 = vld [vmem:[#allocation9 + $0x98] sm:$0xff]  ;;  %p1452_p12 = pnand %p1451_p10, %p1447_p11 }
  0x4a   : > { %1196 = vmatmul.msk.f32.vlgmr.msra.gmra.mxu2 %vm339_vm0, %v359_v28  ;;  %412 = vmatpush.msra.mxu0 %v365_v30  ;;  %v533_v56 = vld [vmem:[#allocation9 + $0x30] sm:$0xff]  ;;  %v543_v57 = vld [vmem:[#allocation9 + $0x80] sm:$0xff]  ;;  %v530_v58 = vld [vmem:[#allocation9 + $0x18] sm:$0xff] }
  0x4b   : > { %640 = vmatpush.msrb.mxu1 %v573_v37  ;;  %595 = vmatpush.msra.mxu3 %v557_v40  ;;  %v540_v59 = vld [vmem:[#allocation9 + $0x68] sm:$0xff]  ;;  %v579_v60 = vld [vmem:[#allocation9 + $0x1a0] sm:$0xff]  ;;  %v578_v62 = vld [vmem:[#allocation9 + $0x198] sm:$0xff] }
  0x4c   : > { %413 = vmatpush.msra.mxu0 %v362_v31  ;;  %680 = vmatpush.msrb.mxu2 %v579_v60  ;;  %v527_v61 = vld [vmem:[#allocation9] sm:$0xff]  ;;  %v537_v63 = vld [vmem:[#allocation9 + $0x50] sm:$0xff]  ;;  %v576_v1 = vld [vmem:[#allocation9 + $0x188] sm:$0xff] }
  0x4d   : > { %1190 = vmatmul.msk.f32.vlgmr.msra.gmra.mxu0 %vm339_vm0, %v359_v28  ;;  %641 = vmatpush.msrb.mxu1 %v570_v39  ;;  %v1704_v2 = vld [vmem:[#allocation3 + $0x8] sm:$0xff]  ;;  %v574_v3 = vld [vmem:[#allocation9 + $0x178] sm:$0xff]  ;;  %v568_v8 = vld [vmem:[#allocation9 + $0x148] sm:$0xff] }
  0x4e   : > { %596 = vmatpush.msra.mxu3 %v554_v42  ;;  %629 = vmatpush.msrb.mxu0 %v578_v62  ;;  %v534_v4 = vld [vmem:[#allocation9 + $0x38] sm:$0xff]  ;;  %v571_v5 = vld [vmem:[#allocation9 + $0x160] sm:$0xff]  ;;  %v528_v9 = vld [vmem:[#allocation9 + $0x8] sm:$0xff] }
  0x4f   : > { %642 = vmatpush.msrb.mxu1 %v567_v41  ;;  %681 = vmatpush.msrb.mxu2 %v576_v1  ;;  %v531_v7 = vld [vmem:[#allocation9 + $0x20] sm:$0xff]  ;;  %v565_v10 = vld [vmem:[#allocation9 + $0x130] sm:$0xff]  ;;  %v562_v12 = vld [vmem:[#allocation9 + $0x118] sm:$0xff] }
  0x50   : > { %597 = vmatpush.msra.mxu3 %v551_v44  ;;  %v575_v11 = vld [vmem:[#allocation9 + $0x180] sm:$0xff]  ;;  %v1709_v13 = vld [vmem:[#allocation3 + $0x18] sm:$0xff]  ;;  %v580_v15 = vld [vmem:[#allocation9 + $0x1a8] sm:$0xff] }
  0x51   : > { %1194 = vmatmul.msk.f32.gmra.mxu1 %vm339_vm0, %v360_v32  ;;  %630 = vmatpush.msrb.mxu0 %v575_v11  ;;  %v559_v14 = vld [vmem:[#allocation9 + $0x100] sm:$0xff]  ;;  %v556_v18 = vld [vmem:[#allocation9 + $0xe8] sm:$0xff]  ;;  %v553_v21 = vld [vmem:[#allocation9 + $0xd0] sm:$0xff] }
  0x52   : > { %1197 = vmatmul.msk.f32.gmra.mxu2 %vm339_vm0, %v360_v32  ;;  %643 = vmatpush.msrb.mxu1 %v564_v43  ;;  %v550_v23 = vld [vmem:[#allocation9 + $0xb8] sm:$0xff]  ;;  %v1723_v0 = vld [vmem:[%s1829_s4] sm:$0x7]  ;;  %v544_v31 = vld [vmem:[#allocation9 + $0x88] sm:$0xff] }
  0x53   : > { %598 = vmatpush.msra.mxu3 %v548_v46  ;;  %732 = vmatpush.msra.mxu0 %v580_v15  ;;  %v526_v25 = vld [vmem:[#allocation3 + $0x28] sm:$0x3]  ;;  %v541_v38 = vld [vmem:[#allocation9 + $0x70] sm:$0xff]  ;;  %v538_v42 = vld [vmem:[#allocation9 + $0x58] sm:$0xff] }
  0x54   : > { %644 = vmatpush.msrb.mxu1 %v561_v45  ;;  %v547_v26 = vld [vmem:[#allocation9 + $0xa0] sm:$0xff]  ;;  %v577_v43 = vld [vmem:[#allocation9 + $0x190] sm:$0xff]  ;;  %v836_v11 = vld [vmem:[#allocation10 + $0x158] sm:$0xff] }
  0x55   : > { %1191 = vmatmul.msk.f32.gmra.mxu0 %vm339_vm0, %v360_v32  ;;  %599 = vmatpush.msra.mxu3 %v545_v48  ;;  %v1732_v35 = vld [vmem:[%s338_s18] sm:$0x7]  ;;  %v833_v15 = vld [vmem:[#allocation10 + $0x140] sm:$0xff] }
  0x56   : > { %645 = vmatpush.msrb.mxu1 %v558_v47  ;;  %v506_v41 = vperm.slane %v1732_v35, 0  ;;  %733 = vmatpush.msra.mxu0 %v577_v43  ;;  %v535_v45 = vld [vmem:[#allocation9 + $0x40] sm:$0xff]  ;;  %v808_v43 = vld [vmem:[#allocation10 + $0x78] sm:$0xff] }
  0x57   : > { %600 = vmatpush.msra.mxu3 %v542_v50  ;;  %v532_v50 = vld [vmem:[#allocation9 + $0x28] sm:$0xff] }
  0x58   : > { %646 = vmatpush.msrb.mxu1 %v555_v49 }
  0x59   : > { %1195 = vmatmul.msk.f32.gmra.mxu1 %vm339_vm0, %v361_v33  ;;  %601 = vmatpush.msra.mxu3 %v539_v52 }
  0x5a   : > { %1198 = vmatmul.msk.f32.gmra.mxu2 %vm339_vm0, %v361_v33  ;;  %647 = vmatpush.msrb.mxu1 %v552_v51 }
  0x5b   : > { %602 = vmatpush.msra.mxu3 %v536_v54  ;;  %v529_v54 = vld [vmem:[#allocation9 + $0x10] sm:$0xff] }
  0x5c   : > { %648 = vmatpush.msrb.mxu1 %v549_v53 }
  0x5d   : > { %1192 = vmatmul.msk.f32.gmra.mxu0 %vm339_vm0, %v361_v33  ;;  %603 = vmatpush.msra.mxu3 %v533_v56  ;;  %v501_v33 = vperm.slane %v1723_v0, 0 }
  0x5e   : > { %649 = vmatpush.msrb.mxu1 %v546_v55 }
  0x5f   : > { %604 = vmatpush.msra.mxu3 %v530_v58 }
  0x60   : > { %650 = vmatpush.msrb.mxu1 %v543_v57 }
  0x61   : > { %605 = vmatpush.msra.mxu3 %v527_v61 }
  0x62   : > { %651 = vmatpush.msrb.mxu1 %v540_v59  ;;  %1202 = vmatmul.msk.f32.vlgmr.msrb.gmra.mxu2 %vm345_vm3, %v1704_v2 }
  0x63   : > { %692 = vmatpush.msrb.mxu3 %v574_v3 }
  0x64   : > { %652 = vmatpush.msrb.mxu1 %v537_v63 }
  0x65   : > { %693 = vmatpush.msrb.mxu3 %v571_v5  ;;  %1199 = vmatmul.msk.f32.vlgmr.msrb.gmra.mxu0 %vm345_vm3, %v1704_v2  ;;  %v844_v5 = vld [vmem:[#allocation10 + $0x198] sm:$0xff] }
  0x66   : > { %653 = vmatpush.msrb.mxu1 %v534_v4 }
  0x67   : > { %694 = vmatpush.msrb.mxu3 %v568_v8  ;;  %v839_v8 = vld [vmem:[#allocation10 + $0x170] sm:$0xff] }
  0x68   : > { %654 = vmatpush.msrb.mxu1 %v531_v7  ;;  %v838_v7 = vld [vmem:[#allocation10 + $0x168] sm:$0xff] }
  0x69   : > { %695 = vmatpush.msrb.mxu3 %v565_v10  ;;  %856 = vmatpush.msra.mxu2 %v838_v7  ;;  %v835_v10 = vld [vmem:[#allocation10 + $0x150] sm:$0xff] }
  0x6a   : > { %655 = vmatpush.msrb.mxu1 %v528_v9  ;;  %1203 = vmatmul.msk.f32.gmra.mxu2 %vm345_vm3, %v1709_v13  ;;  %v840_v9 = vld [vmem:[#allocation10 + $0x178] sm:$0xff] }
  0x6b   : > { %696 = vmatpush.msrb.mxu3 %v562_v12  ;;  %v837_v12 = vld [vmem:[#allocation10 + $0x160] sm:$0xff]  ;;  %857 = vmatpush.msra.mxu2 %v835_v10  ;;  %v842_v10 = vld [vmem:[#allocation10 + $0x188] sm:$0xff] }
  0x6c   : > { %895 = vmatpush.msra.mxu1 %v844_v5  ;;  %v795_v5 = vld [vmem:[#allocation10 + $0x10] sm:$0xff] }
  0x6d   : > { %697 = vmatpush.msrb.mxu3 %v559_v14  ;;  %1200 = vmatmul.msk.f32.gmra.mxu0 %vm345_vm3, %v1709_v13  ;;  %v832_v14 = vld [vmem:[#allocation10 + $0x138] sm:$0xff] }
  0x6e   : > { %858 = vmatpush.msra.mxu2 %v832_v14 }
  0x6f   : > { %698 = vmatpush.msrb.mxu3 %v556_v18  ;;  %v830_v18 = vld [vmem:[#allocation10 + $0x128] sm:$0xff] }
  0x71   : > { %699 = vmatpush.msrb.mxu3 %v553_v21  ;;  %v826_v21 = vld [vmem:[#allocation10 + $0x108] sm:$0xff] }
  0x72   : > { %1204 = vmatmul.msk.f32.gmra.mxu2 %vm345_vm3, %v526_v25 }
  0x73   : > { %700 = vmatpush.msrb.mxu3 %v550_v23  ;;  %v828_v23 = vld [vmem:[#allocation10 + $0x118] sm:$0xff] }
  0x75   : > { %701 = vmatpush.msrb.mxu3 %v547_v26  ;;  %1201 = vmatmul.msk.f32.gmra.mxu0 %vm345_vm3, %v526_v25  ;;  %v825_v26 = vld [vmem:[#allocation10 + $0x100] sm:$0xff] }
  0x77   : > { %702 = vmatpush.msrb.mxu3 %v544_v31  ;;  %v818_v31 = vld [vmem:[#allocation10 + $0xc8] sm:$0xff] }
  0x79   : > { %703 = vmatpush.msrb.mxu3 %v541_v38 }
  0x7b   : > { %704 = vmatpush.msrb.mxu3 %v538_v42  ;;  %v813_v42 = vld [vmem:[#allocation10 + $0xa0] sm:$0xff] }
  0x7d   : > { %705 = vmatpush.msrb.mxu3 %v535_v45  ;;  %1205 = vmatmul.msk.f32.vlgmr.msra.gmra.mxu0 %vm345_vm3, %v1704_v2  ;;  %v810_v45 = vld [vmem:[#allocation10 + $0x88] sm:$0xff] }
  0x7f   : > { %706 = vmatpush.msrb.mxu3 %v532_v50 }
  0x81   : > { %707 = vmatpush.msrb.mxu3 %v529_v54 }
  0x85   : > { %1206 = vmatmul.msk.f32.gmra.mxu0 %vm345_vm3, %v1709_v13 }
  0x8d   : > { %1207 = vmatmul.msk.f32.gmra.mxu0 %vm345_vm3, %v526_v25  ;;  %v824_v25 = vld [vmem:[#allocation10 + $0xf8] sm:$0xff] }
  0xc6   : > { %v440_v6 = vpop.f32.mrf.mxu1 }
  0xc7   : > { %v479_v22 = vrot.slane %v440_v6, 1  ;;  %v841_v6 = vld [vmem:[#allocation10 + $0x180] sm:$0xff] }
  0xc8   : > { %896 = vmatpush.msra.mxu1 %v841_v6 }
  0xca   : > { %v415_v17 = vpop.f32.mrf.mxu0 }
  0xcd   : > { %v466_v16 = vpop.f32.mrf.mxu2 }
  0xce   : > { %v443_v19 = vpop.f32.mrf.mxu1  ;;  %v492_v29 = vrot.slane %v466_v16, 2  ;;  %v834_v16 = vld [vmem:[#allocation10 + $0x148] sm:$0xff] }
  0xcf   : > { %v480_v20 = vrot.slane %v443_v19, 1  ;;  %v831_v19 = vld [vmem:[#allocation10 + $0x130] sm:$0xff] }
  0xd1   : > { %v481_v24 = vsel %vm478_vm5, %v479_v22, %v480_v20  ;;  %v827_v22 = vld [vmem:[#allocation10 + $0x110] sm:$0xff] }
  0xd2   : > { %v418_v28 = vpop.f32.mrf.mxu0  ;;  %v486_v32 = vadd.f32 %v481_v24, %v415_v17  ;;  %v829_v17 = vld [vmem:[#allocation10 + $0x120] sm:$0xff]  ;;  %v823_v24 = vld [vmem:[#allocation10 + $0xf0] sm:$0xff] }
  0xd3   : > { %859 = vmatpush.msra.mxu2 %v829_v17 }
  0xd5   : > { %v469_v27 = vpop.f32.mrf.mxu2  ;;  %860 = vmatpush.msra.mxu2 %v826_v21 }
  0xd6   : > { %v493_v30 = vrot.slane %v469_v27, 2  ;;  %v446_v34 = vpop.f32.mrf.mxu1  ;;  %v820_v27 = vld [vmem:[#allocation10 + $0xd8] sm:$0xff] }
  0xd7   : > { %v482_v37 = vrot.slane %v446_v34, 1  ;;  %861 = vmatpush.msra.mxu2 %v823_v24  ;;  %v814_v34 = vld [vmem:[#allocation10 + $0xa8] sm:$0xff]  ;;  %v843_v24 = vld [vmem:[#allocation10 + $0x190] sm:$0xff] }
  0xd8   : > { %v494_v36 = vsel %vm491_vm6, %v492_v29, %v493_v30  ;;  %v822_v29 = vld [vmem:[#allocation10 + $0xe8] sm:$0xff] }
  0xd9   : > { %v499_v39 = vadd.f32 %v494_v36, %v486_v32  ;;  %v483_v44 = vsel %vm478_vm5, %v480_v20, %v482_v37  ;;  %862 = vmatpush.msra.mxu2 %v820_v27  ;;  %v819_v32 = vld [vmem:[#allocation10 + $0xd0] sm:$0xff]  ;;  %v816_v37 = vld [vmem:[#allocation10 + $0xb8] sm:$0xff] }
  0xda   : > { %v421_v48 = vpop.f32.mrf.mxu0  ;;  %v487_v52 = vadd.f32 %v483_v44, %v418_v28  ;;  %v821_v28 = vld [vmem:[#allocation10 + $0xe0] sm:$0xff]  ;;  %v815_v36 = vld [vmem:[#allocation10 + $0xb0] sm:$0xff] }
  0xdb   : > { %v502_v40 = vadd.f32 %v501_v33, %v499_v39  ;;  %v809_v44 = vld [vmem:[#allocation10 + $0x80] sm:$0xff]  ;;  %v807_v48 = vld [vmem:[#allocation10 + $0x70] sm:$0xff] }
  0xdd   : > { %v504_v46 = vmax.f32 %v502_v40, 0.0  ;;  %v472_v47 = vpop.f32.mrf.mxu2  ;;  %v811_v40 = vld [vmem:[#allocation10 + $0x90] sm:$0xff] }
  0xde   : > { %v495_v49 = vrot.slane %v472_v47, 2  ;;  %v806_v47 = vld [vmem:[#allocation10 + $0x68] sm:$0xff] }
  0xdf   : > { %v507_v51 = vmul.f32 %v506_v41, %v504_v46  ;;  %v805_v46 = vld [vmem:[#allocation10 + $0x60] sm:$0xff] }
  0xe0   : > { %v496_v53 = vsel %vm491_vm6, %v493_v30, %v495_v49  ;;  %v817_v30 = vld [vmem:[#allocation10 + $0xc0] sm:$0xff]  ;;  %v1757_v49 = vld [vmem:[#allocation3 + $0x28] sm:$0x3] }
  0xe1   : > { %v512_v55 = vrot.slane %v507_v51, 7  ;;  %v500_v56 = vadd.f32 %v496_v53, %v487_v52  ;;  %863 = vmatpush.msra.mxu2 %v817_v30  ;;  %v802_v51 = vld [vmem:[#allocation10 + $0x48] sm:$0xff]  ;;  %v803_v52 = vld [vmem:[#allocation10 + $0x50] sm:$0xff]  ;;  %v804_v53 = vld [vmem:[#allocation10 + $0x58] sm:$0xff] }
  0xe2   : > { %v1745_v1 = vpop.f32.mrf.mxu0 }
  0xe3   : > { %518 = vst [vmem:[#allocation3] sm:$0xfe] %v512_v55  ;;  %v503_v57 = vadd.f32 %v501_v33, %v500_v56  ;;  %864 = vmatpush.msra.mxu2 %v814_v34  ;;  %v800_v56 = vld [vmem:[#allocation10 + $0x38] sm:$0xff] }
  0xe5   : > { %v505_v58 = vmax.f32 %v503_v57, 0.0  ;;  %v683_v39 = vpop.f32.mrf.mxu2  ;;  %865 = vmatpush.msra.mxu2 %v811_v40  ;;  %v801_v57 = vld [vmem:[#allocation10 + $0x40] sm:$0xff] }
  0xe7   : > { %v508_v59 = vmul.f32 %v506_v41, %v505_v58  ;;  %v812_v41 = vld [vmem:[#allocation10 + $0x98] sm:$0xff]  ;;  %866 = vmatpush.msra.mxu2 %v808_v43 }
  0xe9   : > { %v513_v60 = vrot.slane %v508_v59, 7  ;;  %867 = vmatpush.msra.mxu2 %v805_v46 }
  0xea   : > { %v521_v61 = vld [vmem:[#allocation3] sm:$0xff]  ;;  %v1747_v3 = vpop.f32.mrf.mxu0 }
  0xeb   : > { %520 = vst [vmem:[#allocation3 + $0x20] sm:$0x1] %v513_v60  ;;  %606 = vmatmul.f32.vlgmr.msra.gmra.mxu3 %v521_v61  ;;  %656 = vmatmul.f32.vlgmr.msrb.gmra.mxu1 %v521_v61  ;;  %v514_v62 = vsel %vm511_vm7, %v512_v55, %v513_v60  ;;  %v799_v55 = vld [vmem:[#allocation10 + $0x30] sm:$0xff]  ;;  %v796_v60 = vld [vmem:[#allocation10 + $0x18] sm:$0xff] }
  0xec   : > { %906 = vmatpush.msra.mxu3 %v839_v8  ;;  %958 = vmatpush.msrb.mxu1 %v840_v9  ;;  %v846_v8 = vld [vmem:[#allocation10 + $0x1a8] sm:$0xff]  ;;  %v845_v9 = vld [vmem:[#allocation10 + $0x1a0] sm:$0xff] }
  0xed   : > { %868 = vmatpush.msra.mxu2 %v802_v51  ;;  %v686_v59 = vpop.f32.mrf.mxu2  ;;  %946 = vmatpush.msrb.mxu0 %v845_v9 }
  0xee   : > { %907 = vmatpush.msra.mxu3 %v836_v11  ;;  %959 = vmatpush.msrb.mxu1 %v837_v12 }
  0xef   : > { %869 = vmatpush.msra.mxu2 %v799_v55  ;;  %947 = vmatpush.msrb.mxu0 %v842_v10 }
  0xf0   : > { %908 = vmatpush.msra.mxu3 %v833_v15  ;;  %960 = vmatpush.msrb.mxu1 %v834_v16 }
  0xf1   : > { %870 = vmatpush.msra.mxu2 %v796_v60  ;;  %1211 = vmatmul.msk.f32.vlgmr.msrb.gmra.mxu0 %vm345_vm3, %v1704_v2 }
  0xf2   : > { %v525_v63 = vld [vmem:[#allocation3 + $0x20] sm:$0x3]  ;;  %v638_v4 = vpop.f32.mrf.mxu0  ;;  %909 = vmatpush.msra.mxu3 %v830_v18  ;;  %961 = vmatpush.msrb.mxu1 %v831_v19 }
  0xf3   : > { %609 = vmatmul.f32.gmra.mxu3 %v514_v62  ;;  %659 = vmatmul.f32.gmra.mxu1 %v514_v62  ;;  %v794_v4 = vld [vmem:[#allocation10 + $0x8] sm:$0xff] }
  0xf4   : > { %910 = vmatpush.msra.mxu3 %v827_v22  ;;  %962 = vmatpush.msrb.mxu1 %v828_v23 }
  0xf5   : > { %v689_v16 = vpop.f32.mrf.mxu2 }
  0xf6   : > { %911 = vmatpush.msra.mxu3 %v824_v25  ;;  %963 = vmatpush.msrb.mxu1 %v825_v26 }
  0xf8   : > { %912 = vmatpush.msra.mxu3 %v821_v28  ;;  %964 = vmatpush.msrb.mxu1 %v822_v29  ;;  %v768_v29 = vperm.slane %v1723_v0, 1 }
  0xf9   : > { %1212 = vmatmul.msk.f32.gmra.mxu0 %vm345_vm3, %v1709_v13 }
  0xfa   : > { %913 = vmatpush.msra.mxu3 %v818_v31  ;;  %965 = vmatpush.msrb.mxu1 %v819_v32  ;;  %v735_v54 = vpop.f32.mrf.mxu0 }
  0xfb   : > { %612 = vmatmul.f32.gmra.mxu3 %v525_v63  ;;  %662 = vmatmul.f32.gmra.mxu1 %v525_v63 }
  0xfc   : > { %914 = vmatpush.msra.mxu3 %v815_v36  ;;  %966 = vmatpush.msrb.mxu1 %v816_v37  ;;  %v773_v37 = vperm.slane %v1732_v35, 1 }
  0xfe   : > { %915 = vmatpush.msra.mxu3 %v812_v41  ;;  %967 = vmatpush.msrb.mxu1 %v813_v42 }
 0x100   : > { %916 = vmatpush.msra.mxu3 %v809_v44  ;;  %968 = vmatpush.msrb.mxu1 %v810_v45 }
 0x101   : > { %1213 = vmatmul.msk.f32.gmra.mxu0 %vm345_vm3, %v1757_v49 }
 0x102   : > { %917 = vmatpush.msra.mxu3 %v806_v47  ;;  %969 = vmatpush.msrb.mxu1 %v807_v48  ;;  %v738_v12 = vpop.f32.mrf.mxu0 }
 0x103   : > { %708 = vmatmul.f32.vlgmr.msrb.gmra.mxu3 %v521_v61  ;;  %1208 = vmatmul.msk.f32.vlgmr.msra.gmra.mxu1 %vm345_vm3, %v1704_v2  ;;  %v797_v61 = vld [vmem:[#allocation10 + $0x20] sm:$0xff] }
 0x104   : > { %918 = vmatpush.msra.mxu3 %v803_v52  ;;  %970 = vmatpush.msrb.mxu1 %v804_v53 }
 0x106   : > { %919 = vmatpush.msra.mxu3 %v800_v56  ;;  %971 = vmatpush.msrb.mxu1 %v801_v57 }
 0x108   : > { %920 = vmatpush.msra.mxu3 %v797_v61 }
 0x10a   : > { %921 = vmatpush.msra.mxu3 %v794_v4  ;;  %v741_v34 = vpop.f32.mrf.mxu0 }
 0x10b   : > { %711 = vmatmul.f32.gmra.mxu3 %v514_v62  ;;  %1209 = vmatmul.msk.f32.gmra.mxu1 %vm345_vm3, %v1709_v13  ;;  %v798_v62 = vld [vmem:[#allocation10 + $0x28] sm:$0xff] }
 0x10c   : > { %972 = vmatpush.msrb.mxu1 %v798_v62 }
 0x10e   : > { %973 = vmatpush.msrb.mxu1 %v795_v5 }
 0x113   : > { %714 = vmatmul.f32.gmra.mxu3 %v525_v63  ;;  %1210 = vmatmul.msk.f32.gmra.mxu1 %vm345_vm3, %v1757_v49  ;;  %v793_v63 = vld [vmem:[#allocation10] sm:$0xff] }
 0x114   : > { %871 = vmatpush.msra.mxu2 %v793_v63 }
 0x116   : > { %998 = vmatpush.msrb.mxu2 %v846_v8 }
 0x118   : > { %999 = vmatpush.msrb.mxu2 %v843_v24 }
 0x168   : > { %v657_v38 = vpop.f32.mrf.mxu1 }
 0x169   : > { %v684_v11 = vadd.f32 %v683_v39, %v657_v38 }
 0x16b   : > { %v747_v17 = vrot.slane %v684_v11, 1 }
 0x16e   : > { %v1749_v20 = vpop.f32.mrf.mxu3 }
 0x16f   : > { %v633_v25 = vadd.f32 %v1745_v1, %v1749_v20 }
 0x170   : > { %v660_v58 = vpop.f32.mrf.mxu1 }
 0x171   : > { %v687_v7 = vadd.f32 %v686_v59, %v660_v58  ;;  %v949_v58 = vpop.f32.mrf.mxu0 }
 0x173   : > { %v748_v14 = vrot.slane %v687_v7, 1 }
 0x175   : > { %v749_v21 = vsel %vm478_vm5, %v747_v17, %v748_v14 }
 0x176   : > { %v1753_v33 = vpop.f32.mrf.mxu3  ;;  %v754_v28 = vadd.f32 %v749_v21, %v633_v25 }
 0x177   : > { %v636_v39 = vadd.f32 %v1747_v3, %v1753_v33 }
 0x178   : > { %v663_v15 = vpop.f32.mrf.mxu1 }
 0x179   : > { %v690_v22 = vadd.f32 %v689_v16, %v663_v15  ;;  %v952_v61 = vpop.f32.mrf.mxu0 }
 0x17b   : > { %v750_v30 = vrot.slane %v690_v22, 1 }
 0x17d   : > { %v751_v1 = vsel %vm478_vm5, %v748_v14, %v750_v30 }
 0x17e   : > { %v613_v50 = vpop.f32.mrf.mxu3  ;;  %v755_v42 = vadd.f32 %v751_v1, %v636_v39 }
 0x180   : > { %v898_v33 = vpop.f32.mrf.mxu1 }
 0x181   : > { %v955_v7 = vpop.f32.mrf.mxu0 }
 0x186   : > { %v709_v6 = vpop.f32.mrf.mxu3 }
 0x187   : > { %v736_v18 = vadd.f32 %v735_v54, %v709_v6 }
 0x188   : > { %v901_v54 = vpop.f32.mrf.mxu1 }
 0x189   : > { %v759_v26 = vrot.slane %v736_v18, 2 }
 0x18e   : > { %v712_v19 = vpop.f32.mrf.mxu3 }
 0x18f   : > { %v739_v23 = vadd.f32 %v738_v12, %v712_v19  ;;  %v1034_v19 = vperm.slane %v1723_v0, 2 }
 0x190   : > { %v904_v55 = vpop.f32.mrf.mxu1 }
 0x191   : > { %v760_v27 = vrot.slane %v739_v23, 2 }
 0x193   : > { %v761_v31 = vsel %vm491_vm6, %v759_v26, %v760_v27  ;;  %v1039_v26 = vperm.slane %v1732_v35, 2 }
 0x194   : > { %v766_v32 = vadd.f32 %v761_v31, %v754_v28 }
 0x196   : > { %v769_v36 = vadd.f32 %v768_v29, %v766_v32  ;;  %v715_v38 = vpop.f32.mrf.mxu3 }
 0x197   : > { %v742_v20 = vadd.f32 %v741_v34, %v715_v38 }
 0x198   : > { %v771_v40 = vmax.f32 %v769_v36, 0.0 }
 0x199   : > { %v762_v41 = vrot.slane %v742_v20, 2 }
 0x19a   : > { %v774_v43 = vmul.f32 %v773_v37, %v771_v40 }
 0x19b   : > { %v763_v44 = vsel %vm491_vm6, %v760_v27, %v762_v41 }
 0x19c   : > { %v778_v45 = vrot.slane %v774_v43, 7  ;;  %v767_v46 = vadd.f32 %v763_v44, %v755_v42 }
 0x19e   : > { %784 = vst [vmem:[#allocation3] sm:$0xfe] %v778_v45  ;;  %v770_v47 = vadd.f32 %v768_v29, %v767_v46 }
 0x1a0   : > { %v772_v48 = vmax.f32 %v770_v47, 0.0 }
 0x1a2   : > { %v775_v50 = vmul.f32 %v773_v37, %v772_v48 }
 0x1a4   : > { %v779_v51 = vrot.slane %v775_v50, 7 }
 0x1a5   : > { %v787_v52 = vld [vmem:[#allocation3] sm:$0xff] }
 0x1a6   : > { %v780_v53 = vsel %vm511_vm7, %v778_v45, %v779_v51  ;;  %786 = vst [vmem:[#allocation3 + $0x20] sm:$0x1] %v779_v51  ;;  %872 = vmatmul.f32.vlgmr.msra.gmra.mxu2 %v787_v52  ;;  %922 = vmatmul.f32.vlgmr.msra.gmra.mxu3 %v787_v52 }
 0x1a7   : > { %974 = vmatmul.f32.vlgmr.msrb.gmra.mxu1 %v787_v52 }
 0x1ad   : > { %v791_v3 = vld [vmem:[#allocation3 + $0x20] sm:$0x3] }
 0x1ae   : > { %875 = vmatmul.f32.gmra.mxu2 %v780_v53  ;;  %925 = vmatmul.f32.gmra.mxu3 %v780_v53 }
 0x1af   : > { %977 = vmatmul.f32.gmra.mxu1 %v780_v53 }
 0x1b6   : > { %878 = vmatmul.f32.gmra.mxu2 %v791_v3  ;;  %928 = vmatmul.f32.gmra.mxu3 %v791_v3 }
 0x1b7   : > { %980 = vmatmul.f32.gmra.mxu1 %v791_v3 }
 0x1be   : > { %1214 = vmatmul.msk.f32.vlgmr.msrb.gmra.mxu2 %vm345_vm3, %v1704_v2 }
 0x1c6   : > { %1215 = vmatmul.msk.f32.gmra.mxu2 %vm345_vm3, %v1709_v13 }
 0x1ce   : > { %1216 = vmatmul.msk.f32.gmra.mxu2 %vm345_vm3, %v1757_v49 }
 0x224   : > { %v975_v62 = vpop.f32.mrf.mxu1 }
 0x229   : > { %v873_v56 = vpop.f32.mrf.mxu2  ;;  %v923_v59 = vpop.f32.mrf.mxu3 }
 0x22a   : > { %v950_v2 = vadd.f32 %v949_v58, %v923_v59  ;;  %v899_v15 = vadd.f32 %v898_v33, %v873_v56 }
 0x22c   : > { %v978_v13 = vpop.f32.mrf.mxu1  ;;  %v1013_v9 = vrot.slane %v950_v2, 1 }
 0x231   : > { %v876_v57 = vpop.f32.mrf.mxu2  ;;  %v926_v63 = vpop.f32.mrf.mxu3 }
 0x232   : > { %v953_v5 = vadd.f32 %v952_v61, %v926_v63  ;;  %v902_v30 = vadd.f32 %v901_v54, %v876_v57 }
 0x234   : > { %v1014_v6 = vrot.slane %v953_v5, 1  ;;  %v981_v24 = vpop.f32.mrf.mxu1 }
 0x236   : > { %v1015_v11 = vsel %vm478_vm5, %v1013_v9, %v1014_v6 }
 0x237   : > { %v1020_v18 = vadd.f32 %v1015_v11, %v899_v15 }
 0x239   : > { %v879_v60 = vpop.f32.mrf.mxu2  ;;  %v929_v8 = vpop.f32.mrf.mxu3 }
 0x23a   : > { %v956_v12 = vadd.f32 %v955_v7, %v929_v8 }
 0x23c   : > { %v1016_v21 = vrot.slane %v956_v12, 1 }
 0x23e   : > { %v1017_v28 = vsel %vm478_vm5, %v1014_v6, %v1016_v21 }
 0x23f   : > { %v1021_v34 = vadd.f32 %v1017_v28, %v902_v30 }
 0x241   : > { %v1001_v4 = vpop.f32.mrf.mxu2 }
 0x242   : > { %v1002_v49 = vadd.f32 %v1001_v4, %v975_v62 }
 0x244   : > { %v1025_v16 = vrot.slane %v1002_v49, 2 }
 0x249   : > { %v1004_v10 = vpop.f32.mrf.mxu2 }
 0x24a   : > { %v1005_v14 = vadd.f32 %v1004_v10, %v978_v13 }
 0x24c   : > { %v1026_v17 = vrot.slane %v1005_v14, 2 }
 0x24e   : > { %v1027_v22 = vsel %vm491_vm6, %v1025_v16, %v1026_v17 }
 0x24f   : > { %v1032_v23 = vadd.f32 %v1027_v22, %v1020_v18 }
 0x251   : > { %v1035_v25 = vadd.f32 %v1034_v19, %v1032_v23  ;;  %v1007_v27 = vpop.f32.mrf.mxu2 }
 0x252   : > { %v1008_v29 = vadd.f32 %v1007_v27, %v981_v24 }
 0x253   : > { %v1037_v31 = vmax.f32 %v1035_v25, 0.0 }
 0x254   : > { %v1028_v32 = vrot.slane %v1008_v29, 2 }
 0x255   : > { %v1040_v0 = vmul.f32 %v1039_v26, %v1037_v31 }
 0x256   : > { %v1029_v36 = vsel %vm491_vm6, %v1026_v17, %v1028_v32 }
 0x257   : > { %v1033_v37 = vadd.f32 %v1029_v36, %v1021_v34  ;;  %1042 = vst [vmem:[%s334_s10] sm:$0xff] %v1040_v0 }
 0x259   : > { %v1036_v35 = vadd.f32 %v1034_v19, %v1033_v37 }
 0x25b   : > { %v1038_v38 = vmax.f32 %v1036_v35, 0.0 }
 0x25d   : > { %v1041_v1 = vmul.f32 %v1039_v26, %v1038_v38 }
 0x25f   : > { %1043 = vst [vmem:[%s334_s10 + $0x8] sm:$0xff] %v1041_v1 }
 0x260   : > { %1455 = shalt.err (!%p1452_p12)
}
 0x261   : > { %s1512_s17 = smov 128   ;;  %s1513_s15 = smov 8  }
 0x262   : > { %1238 = dma.vmem_to_hbm [thread:$0]  (%p1632_p7), %s1058_s11, 256, %s1060_s27, %s1045_s25, %s1512_s17, %s1512_s17, %s1513_s15  }
 0x263 PF: > { %s1074_s16 = sand.u32 1, %s1490_s21   ;;  %p1838_p13 = scmp.ge.s32.totalorder %s1502_s24, 2 }
 0x264   : > { %s1075_s14 = scalar_lea.sflag [#allocation6], %s1074_s16 }
 0x265   : > { %p1255_p0 = pnand %p1838_p13, %p1584_p6 }
 0x267   : > { %p1256_p3 = pneg %p1255_p0 }
 0x269   : > { %1485 = dma.done.wait (%p1256_p3), %s1075_s14, 256  }
 0x26a   : > { %1487 = vsyncadd (%p1256_p3), %s1075_s14, 4294967040  ;;  %p21_p5 = scmp.ge.s32.totalorder %s1616_s7, 4   ;;  %s1839_s21 = smov %s1494_s22 }
 0x26b   : > { %s1840_s22 = smov %s1498_s23  ;;  %s1841_s23 = smov %s1628_s12 }
 0x26c   : > { %s1842_s24 = smov %s1616_s7  ;;  %23 = sbr.rel (!%p21_p5) target bundleno = 7 (0x7), region = 104 }
 0x271   :  { %1081 = vsyncpa [#allocation5], 1 }
 0x272   :  { %1083 = vsyncpa [#allocation5 + $0x1], 1 }
 0x273   :  { %1084 = vsyncpa [#allocation8], 1 }
 0x274   :  { %1085 = vsyncpa [#allocation11], 1 }
 0x275   :  { %1086 = vsyncpa [#allocation6], 1 }
 0x276   :  { %1088 = vsyncpa [#allocation6 + $0x1], 1 }

</bundles_post_ra>
